<compile_context>
chip_gen: v6e
topology: v6e:2x2x1
jax: 0.10.0
libtpu: 0.0.40
codegen_flags: <defaults>
</compile_context>

<pallas_src>
import functools

import jax
import jax.numpy as jnp
from jax import lax
from jax.experimental import pallas as pl
from jax.experimental.pallas import tpu as pltpu


def _sublane_partial(x, groups, subr):
    """Sum `groups` sublane-groups: (..., groups*subr, 128) -> (..., subr, 128).

    Static, vreg-aligned slices + VALU adds only (no reshape, no XLU).
    """
    acc = x[..., 0:subr, :]
    for g in range(1, groups):
        acc = acc + x[..., g * subr:(g + 1) * subr, :]
    return acc


def _focal_tversky_kernel(
    pred_ref,      # (1, C, TR, 128)        logits tile
    tgt_ref,       # (1, 1, TR, 128)        int32 labels tile
    part_ref,      # (1, 2C+1, SUBR, 128)   f32 per-batch partials (resident over j)
    *,
    num_classes,
    subr,
    focal_alpha,
    focal_gamma,
):
    j = pl.program_id(1)
    C = num_classes

    @pl.when(j == 0)
    def _():
        part_ref[...] = jnp.zeros_like(part_ref)

    logits = pred_ref[0].astype(jnp.float32)   # (C, TR, 128)
    tgt = tgt_ref[0]                           # (1, TR, 128) int32
    tr = logits.shape[1]
    groups = tr // subr

    # --- softmax / log-softmax over the class axis (leading => VPU-only) ---
    m = jnp.max(logits, axis=0, keepdims=True)       # (1, TR, 128)
    z = logits - m                                   # (C, TR, 128)
    e = jnp.exp(z)                                   # (C, TR, 128)
    denom = jnp.sum(e, axis=0, keepdims=True)        # (1, TR, 128)
    inv_denom = 1.0 / denom                          # exact (keeps 1e-5 tolerance)
    probs = e * inv_denom                            # (C, TR, 128)
    logsumexp = jnp.log(denom)                       # (1, TR, 128)

    # one-hot of the target over the class axis
    cls_ids = lax.broadcasted_iota(jnp.int32, logits.shape, 0)   # (C, TR, 128)
    onehot = (cls_ids == tgt).astype(jnp.float32)                # (C, TR, 128)

    # --- focal loss (per pixel), reusing probs[target] as pt = exp(-ce) ---
    p_tgt = probs * onehot                           # (C, TR, 128)
    pt = jnp.sum(p_tgt, axis=0)                      # (TR, 128)
    z_t = jnp.sum(z * onehot, axis=0)                # (TR, 128)
    ce = logsumexp[0] - z_t                          # (TR, 128) numerically safe

    one_minus_pt = jnp.maximum(1.0 - pt, 0.0)
    if focal_gamma == 2.0:
        w = one_minus_pt * one_minus_pt
    elif focal_gamma == 1.0:
        w = one_minus_pt
    elif focal_gamma == 0.0:
        w = jnp.ones_like(one_minus_pt)
    else:
        w = jnp.power(one_minus_pt, jnp.float32(focal_gamma))
    focal = focal_alpha * w * ce                     # (TR, 128)

    # --- sublane-group tree reduction, then accumulate into resident output ---
    tp_part = _sublane_partial(p_tgt, groups, subr)  # (C, SUBR, 128)
    ps_part = _sublane_partial(probs, groups, subr)  # (C, SUBR, 128)
    fo_part = _sublane_partial(focal, groups, subr)  # (SUBR, 128)

    part_ref[0, 0:C] += tp_part
    part_ref[0, C:2 * C] += ps_part
    part_ref[0, 2 * C] += fo_part


def focal_tversky_loss(
    pred,            # (N, C, H, W) float logits (NCHW, like PyTorch)
    target,          # (N, H, W)    int labels in [0, C)
    *,
    focal_alpha=1.0,
    focal_gamma=2.0,
    tversky_alpha=0.5,
    tversky_beta=0.5,
    loss_alpha=0.5,
    smooth=1.0,
    max_rows_per_tile=512,   # 512 rows * 128 lanes = 65536 pixels / grid step
):
    N, C, H, W = pred.shape
    HW = H * W
    P = N * HW
    assert HW % 128 == 0, "H*W must be a multiple of the 128-lane width"
    rows = HW // 128

    itemsize = jnp.dtype(pred.dtype).itemsize
    # Cap the row tile so double-buffered input blocks stay well under v7x's
    # 64 MiB physical VMEM (budget ~40 MiB for inputs).
    bytes_per_row = 2 * (C * 128 * itemsize + 128 * 4)   # double-buffered pred + tgt
    vmem_row_cap = max(8, (int(40 * 2**20 // bytes_per_row) // 8) * 8)
    cap = min(max_rows_per_tile, vmem_row_cap)

    # Pick the biggest sublane-aligned row tile <= cap that divides `rows`;
    # fall back to the full extent (allowed by the (8,128) rule) when small.
    if rows % 8 == 0:
        tr = 8
        cand = cap - (cap % 8)
        while cand >= 8:
            if rows % cand == 0:
                tr = cand
                break
            cand -= 8
    else:
        tr = rows
    subr = 8 if tr % 8 == 0 else tr

    # Free, contiguous reshapes of NCHW (no transpose => no extra HBM copy).
    pred_k = pred.reshape(N, C, rows, 128)
    tgt_k = target.reshape(N, 1, rows, 128).astype(jnp.int32)

    grid = (N, rows // tr)

    kernel = functools.partial(
        _focal_tversky_kernel,
        num_classes=C,
        subr=subr,
        focal_alpha=float(focal_alpha),
        focal_gamma=float(focal_gamma),
    )

    # Explicit VMEM limit with headroom (double-buffered inputs + resident output).
    in_bytes = 2 * tr * 128 * (C * itemsize + 4)
    out_bytes = 2 * (2 * C + 1) * subr * 128 * 4
    vmem_limit = int(min(100 * 2**20, max(32 * 2**20, 2 * (in_bytes + out_bytes))))

    partials = pl.pallas_call(
        kernel,
        out_shape=jax.ShapeDtypeStruct((N, 2 * C + 1, subr, 128), jnp.float32),
        grid_spec=pltpu.PrefetchScalarGridSpec(
            num_scalar_prefetch=0,
            grid=grid,
            in_specs=[
                pl.BlockSpec((1, C, tr, 128), lambda n, j: (n, 0, j, 0)),
                pl.BlockSpec((1, 1, tr, 128), lambda n, j: (n, 0, j, 0)),
            ],
            # Per-batch partial block: resident across the (arbitrary) row axis,
            # distinct per batch => batch axis is safely "parallel" (megacore).
            out_specs=pl.BlockSpec((1, 2 * C + 1, subr, 128),
                                   lambda n, j: (n, 0, 0, 0)),
        ),
        compiler_params=pltpu.CompilerParams(
            dimension_semantics=("parallel", "arbitrary"),
            vmem_limit_bytes=vmem_limit,
        ),
    )(pred_k, tgt_k)

    # ---- finalize in plain JAX (cheap; no in-kernel XLU / sparse stores) ----
    sums = partials.sum(axis=(0, 2, 3))              # (2C+1,)
    tp = sums[:C]                                    # sum probs * onehot per class
    ps = sums[C:2 * C]                               # sum probs per class
    focal_sum = sums[2 * C]

    # Per-class label counts: depend only on labels (negligible vs logits stream).
    counts = jnp.sum(
        (target.reshape(-1)[:, None] == jnp.arange(C)[None, :]).astype(jnp.float32),
        axis=0)

    fp = ps - tp
    fn = counts - tp
    tversky = (tp + smooth) / (tp + tversky_alpha * fp + tversky_beta * fn + smooth)
    tversky_loss = jnp.mean(1.0 - tversky)
    focal_mean = focal_sum / jnp.float32(P)
    return loss_alpha * focal_mean + (1.0 - loss_alpha) * tversky_loss


def _reference(pred, target, *, focal_alpha=1.0, focal_gamma=2.0,
               tversky_alpha=0.5, tversky_beta=0.5, loss_alpha=0.5, smooth=1.0):
    # Pure-JAX reference mirroring the PyTorch module.
    N, C, H, W = pred.shape
    logits = pred.astype(jnp.float32)
    lse = jax.nn.logsumexp(logits, axis=1)                       # (N, H, W)
    tgt_logit = jnp.take_along_axis(logits, target[:, None], axis=1)[:, 0]
    ce = lse - tgt_logit
    pt = jnp.exp(-ce)
    focal = (focal_alpha * (1 - pt) ** focal_gamma * ce).mean()

    probs = jax.nn.softmax(logits, axis=1)
    total = 0.0
    for cls in range(C):
        p = probs[:, cls]
        t = (target == cls).astype(jnp.float32)
        tp = (p * t).sum()
        fp = (p * (1 - t)).sum()
        fn = ((1 - p) * t).sum()
        tv = (tp + smooth) / (tp + tversky_alpha * fp + tversky_beta * fn + smooth)
        total += 1 - tv
    tversky = total / C
    return loss_alpha * focal + (1 - loss_alpha) * tversky


if __name__ == "__main__":
    key = jax.random.PRNGKey(0)

    # (N, C, H, W, max_rows_per_tile) — small shapes exercising all tiling paths:
    #   rows<8 full-extent fallback, single 8-row tile, multi-group tree
    #   reduction, and multi-step row accumulation.
    configs = [
        (2, 3, 16, 16, 512),   # rows=2  -> tr=2  (full-extent fallback)
        (2, 3, 32, 32, 512),   # rows=8  -> tr=8
        (1, 4, 64, 64, 512),   # rows=32 -> tr=32 (4 sublane groups per tile)
        (2, 3, 64, 64, 16),    # rows=32 -> tr=16, grid j=2 (accumulation path)
    ]
    for (N, C, H, W, mrt) in configs:
        k1, k2 = jax.random.split(jax.random.fold_in(key, N * 10000 + C * 100 + H))
        pred = jax.random.normal(k1, (N, C, H, W), dtype=jnp.float32)
        target = jax.random.randint(k2, (N, H, W), 0, C, dtype=jnp.int32)

        loss = jax.block_until_ready(
            focal_tversky_loss(pred, target, max_rows_per_tile=mrt))
        ref = _reference(pred, target)
        assert jnp.allclose(loss, ref, rtol=1e-5, atol=1e-5), (N, C, H, W, loss, ref)

    print("KERNEL_OK")
</pallas_src>

<mosaic_0001>
module attributes {stable_mosaic.version = 11 : i64} {
  func.func @_focal_tversky_kernel(%arg0: i32, %arg1: i32, %arg2: memref<1x3x2x128xf32, #tpu.memory_space<vmem>>, %arg3: memref<1x1x2x128xi32, #tpu.memory_space<vmem>>, %arg4: memref<1x7x2x128xf32, #tpu.memory_space<vmem>>) attributes {dimension_semantics = [#tpu.dimension_semantics<parallel>, #tpu.dimension_semantics<arbitrary>], iteration_bounds = array<i64: 2, 1>, scalar_prefetch = 0 : i64, scratch_operands = 0 : i64, tpu.core_type = #tpu.core_type<tc>, window_params = [{transform_indices = @transform_0, window_bounds = array<i64: 1, 3, 2, 128>}, {transform_indices = @transform_1, window_bounds = array<i64: 1, 1, 2, 128>}, {transform_indices = @transform_2, window_bounds = array<i64: 1, 7, 2, 128>}]} {
    %c0_i32 = arith.constant 0 : i32
    %0 = arith.cmpi eq, %arg1, %c0_i32 : i32
    %1 = arith.extui %0 : i1 to i32
    %c0_i32_0 = arith.constant 0 : i32
    %2 = arith.cmpi ne, %1, %c0_i32_0 : i32
    scf.if %2 {
      %cst_37 = arith.constant 0.000000e+00 : f32
      %56 = vector.broadcast %cst_37 : f32 to vector<1x7x2x128xf32>
      %c0_38 = arith.constant 0 : index
      %c0_39 = arith.constant 0 : index
      %c0_40 = arith.constant 0 : index
      %c0_41 = arith.constant 0 : index
      %57 = vector.load %arg4[%c0_38, %c0_39, %c0_40, %c0_41] : memref<1x7x2x128xf32, #tpu.memory_space<vmem>>, vector<1x7x2x128xf32>
      tpu.vector_store %arg4[%c0_38, %c0_39, %c0_40, %c0_41], %56 {strides = array<i32>} : memref<1x7x2x128xf32, #tpu.memory_space<vmem>>, vector<1x7x2x128xf32>,
    } else {
    }
    %c0 = arith.constant 0 : index
    %c0_1 = arith.constant 0 : index
    %c0_2 = arith.constant 0 : index
    %c0_3 = arith.constant 0 : index
    %3 = vector.load %arg2[%c0, %c0_1, %c0_2, %c0_3] : memref<1x3x2x128xf32, #tpu.memory_space<vmem>>, vector<1x3x2x128xf32>
    %4 = vector.shape_cast %3 : vector<1x3x2x128xf32> to vector<3x2x128xf32>
    %c0_4 = arith.constant 0 : index
    %c0_5 = arith.constant 0 : index
    %c0_6 = arith.constant 0 : index
    %c0_7 = arith.constant 0 : index
    %5 = vector.load %arg3[%c0_4, %c0_5, %c0_6, %c0_7] : memref<1x1x2x128xi32, #tpu.memory_space<vmem>>, vector<1x1x2x128xi32>
    %6 = vector.shape_cast %5 : vector<1x1x2x128xi32> to vector<1x2x128xi32>
    %cst = arith.constant dense<0xFF800000> : vector<2x128xf32>
    %7 = vector.multi_reduction <maximumf>, %4, %cst [0] : vector<3x2x128xf32> to vector<2x128xf32>
    %8 = vector.shape_cast %7 : vector<2x128xf32> to vector<1x2x128xf32>
    %9 = vector.broadcast %8 : vector<1x2x128xf32> to vector<3x2x128xf32>
    %10 = arith.subf %4, %9 : vector<3x2x128xf32>
    %11 = math.exp %10 : vector<3x2x128xf32>
    %cst_8 = arith.constant dense<0.000000e+00> : vector<2x128xf32>
    %12 = vector.multi_reduction <add>, %11, %cst_8 [0] : vector<3x2x128xf32> to vector<2x128xf32>
    %13 = vector.shape_cast %12 : vector<2x128xf32> to vector<1x2x128xf32>
    %cst_9 = arith.constant 1.000000e+00 : f32
    %14 = vector.broadcast %cst_9 : f32 to vector<1x2x128xf32>
    %15 = arith.divf %14, %13 : vector<1x2x128xf32>
    %16 = vector.broadcast %15 : vector<1x2x128xf32> to vector<3x2x128xf32>
    %17 = arith.mulf %11, %16 : vector<3x2x128xf32>
    %18 = math.log %13 : vector<1x2x128xf32>
    %19 = tpu.iota {dimensions = array<i32: 0>} : vector<3x2x128xi32>
    %20 = vector.broadcast %6 : vector<1x2x128xi32> to vector<3x2x128xi32>
    %21 = arith.cmpi eq, %19, %20 : vector<3x2x128xi32>
    %22 = arith.extui %21 : vector<3x2x128xi1> to vector<3x2x128xi32>
    %23 = arith.sitofp %22 : vector<3x2x128xi32> to vector<3x2x128xf32>
    %24 = arith.mulf %17, %23 : vector<3x2x128xf32>
    %cst_10 = arith.constant dense<0.000000e+00> : vector<2x128xf32>
    %25 = vector.multi_reduction <add>, %24, %cst_10 [0] : vector<3x2x128xf32> to vector<2x128xf32>
    %26 = arith.mulf %10, %23 : vector<3x2x128xf32>
    %cst_11 = arith.constant dense<0.000000e+00> : vector<2x128xf32>
    %27 = vector.multi_reduction <add>, %26, %cst_11 [0] : vector<3x2x128xf32> to vector<2x128xf32>
    %28 = vector.shape_cast %18 : vector<1x2x128xf32> to vector<2x128xf32>
    %29 = arith.subf %28, %27 : vector<2x128xf32>
    %cst_12 = arith.constant 1.000000e+00 : f32
    %30 = vector.broadcast %cst_12 : f32 to vector<2x128xf32>
    %31 = arith.subf %30, %25 : vector<2x128xf32>
    %cst_13 = arith.constant 0.000000e+00 : f32
    %32 = vector.broadcast %cst_13 : f32 to vector<2x128xf32>
    %33 = arith.maximumf %31, %32 : vector<2x128xf32>
    %34 = arith.mulf %33, %33 : vector<2x128xf32>
    %cst_14 = arith.constant 1.000000e+00 : f32
    %35 = vector.broadcast %cst_14 : f32 to vector<2x128xf32>
    %36 = arith.mulf %35, %34 : vector<2x128xf32>
    %37 = arith.mulf %36, %29 : vector<2x128xf32>
    %c0_15 = arith.constant 0 : index
    %c0_16 = arith.constant 0 : index
    %c0_17 = arith.constant 0 : index
    %c0_18 = arith.constant 0 : index
    %38 = vector.load %arg4[%c0_15, %c0_16, %c0_17, %c0_18] : memref<1x7x2x128xf32, #tpu.memory_space<vmem>>, vector<1x3x2x128xf32>
    %39 = vector.shape_cast %38 : vector<1x3x2x128xf32> to vector<3x2x128xf32>
    %40 = arith.addf %39, %24 : vector<3x2x128xf32>
    %c0_19 = arith.constant 0 : index
    %c0_20 = arith.constant 0 : index
    %c0_21 = arith.constant 0 : index
    %c0_22 = arith.constant 0 : index
    %41 = vector.load %arg4[%c0_19, %c0_20, %c0_21, %c0_22] : memref<1x7x2x128xf32, #tpu.memory_space<vmem>>, vector<1x3x2x128xf32>
    %42 = vector.shape_cast %41 : vector<1x3x2x128xf32> to vector<3x2x128xf32>
    %43 = vector.shape_cast %40 : vector<3x2x128xf32> to vector<1x3x2x128xf32>
    tpu.vector_store %arg4[%c0_19, %c0_20, %c0_21, %c0_22], %43 {strides = array<i32>} : memref<1x7x2x128xf32, #tpu.memory_space<vmem>>, vector<1x3x2x128xf32>,
    %c0_23 = arith.constant 0 : index
    %c3 = arith.constant 3 : index
    %c0_24 = arith.constant 0 : index
    %c0_25 = arith.constant 0 : index
    %44 = vector.load %arg4[%c0_23, %c3, %c0_24, %c0_25] : memref<1x7x2x128xf32, #tpu.memory_space<vmem>>, vector<1x3x2x128xf32>
    %45 = vector.shape_cast %44 : vector<1x3x2x128xf32> to vector<3x2x128xf32>
    %46 = arith.addf %45, %17 : vector<3x2x128xf32>
    %c0_26 = arith.constant 0 : index
    %c3_27 = arith.constant 3 : index
    %c0_28 = arith.constant 0 : index
    %c0_29 = arith.constant 0 : index
    %47 = vector.load %arg4[%c0_26, %c3_27, %c0_28, %c0_29] : memref<1x7x2x128xf32, #tpu.memory_space<vmem>>, vector<1x3x2x128xf32>
    %48 = vector.shape_cast %47 : vector<1x3x2x128xf32> to vector<3x2x128xf32>
    %49 = vector.shape_cast %46 : vector<3x2x128xf32> to vector<1x3x2x128xf32>
    tpu.vector_store %arg4[%c0_26, %c3_27, %c0_28, %c0_29], %49 {strides = array<i32>} : memref<1x7x2x128xf32, #tpu.memory_space<vmem>>, vector<1x3x2x128xf32>,
    %c0_30 = arith.constant 0 : index
    %c6 = arith.constant 6 : index
    %c0_31 = arith.constant 0 : index
    %c0_32 = arith.constant 0 : index
    %50 = vector.load %arg4[%c0_30, %c6, %c0_31, %c0_32] : memref<1x7x2x128xf32, #tpu.memory_space<vmem>>, vector<1x1x2x128xf32>
    %51 = vector.shape_cast %50 : vector<1x1x2x128xf32> to vector<2x128xf32>
    %52 = arith.addf %51, %37 : vector<2x128xf32>
    %c0_33 = arith.constant 0 : index
    %c6_34 = arith.constant 6 : index
    %c0_35 = arith.constant 0 : index
    %c0_36 = arith.constant 0 : index
    %53 = vector.load %arg4[%c0_33, %c6_34, %c0_35, %c0_36] : memref<1x7x2x128xf32, #tpu.memory_space<vmem>>, vector<1x1x2x128xf32>
    %54 = vector.shape_cast %53 : vector<1x1x2x128xf32> to vector<2x128xf32>
    %55 = vector.shape_cast %52 : vector<2x128xf32> to vector<1x1x2x128xf32>
    tpu.vector_store %arg4[%c0_33, %c6_34, %c0_35, %c0_36], %55 {strides = array<i32>} : memref<1x7x2x128xf32, #tpu.memory_space<vmem>>, vector<1x1x2x128xf32>,
    return
  }
  func.func @transform_0(%arg0: i32, %arg1: i32) -> (i32, i32, i32, i32) {
    %c0_i32 = arith.constant 0 : i32
    %c0_i32_0 = arith.constant 0 : i32
    %c0_i32_1 = arith.constant 0 : i32
    return %arg0, %c0_i32, %arg1, %c0_i32_0 : i32, i32, i32, i32
  }
  func.func @transform_1(%arg0: i32, %arg1: i32) -> (i32, i32, i32, i32) {
    %c0_i32 = arith.constant 0 : i32
    %c0_i32_0 = arith.constant 0 : i32
    %c0_i32_1 = arith.constant 0 : i32
    return %arg0, %c0_i32, %arg1, %c0_i32_0 : i32, i32, i32, i32
  }
  func.func @transform_2(%arg0: i32, %arg1: i32) -> (i32, i32, i32, i32) {
    %c0_i32 = arith.constant 0 : i32
    %c0_i32_0 = arith.constant 0 : i32
    %c0_i32_1 = arith.constant 0 : i32
    %c0_i32_2 = arith.constant 0 : i32
    return %arg0, %c0_i32, %c0_i32_0, %c0_i32_1 : i32, i32, i32, i32
  }
}

</mosaic_0001>

<bundles_post_ra>
// kernel: tpu_custom_call.1
= control target key start
LH: loop header
LB: loop body
LE: loop exit
PB: predicated region body
PF: predicated region fallthrough
CT: control target
= control target key end

     0   :  { %7 = vsyncpa [#allocation3], 0  ;;  %s924_s0 = inlined_call_operand.hbm [shape: f32[2,3,2,128], index: 0, kind: input, shape index: {}]   ;;  %s925_s1 = inlined_call_operand.hbm [shape: s32[2,1,2,128], index: 1, kind: input, shape index: {}]   ;;  %s926_s2 = inlined_call_operand.hbm [shape: f32[2,7,2,128], index: 2, kind: output, shape index: {}]  }
   0x1   :  { %9 = vsyncpa [#allocation3 + $0x1], 0 }
   0x2   :  { %10 = vsyncpa [#allocation6], 0 }
   0x3   :  { %12 = vsyncpa [#allocation6 + $0x1], 0 }
   0x4   :  { %13 = vsyncpa [#allocation4], 0 }
   0x5   :  { %15 = vsyncpa [#allocation4 + $0x1], 0  ;;  %s708_s9 = smov 0   ;;  %s710_s10 = smov 0  }
   0x6   :  { %s712_s11 = smov 0   ;;  %s714_s12 = smov 0  }
   0x7   :  { %s716_s13 = smov 0   ;;  %s718_s14 = smov 0  }
   0x8 LB: > { %s433_s15 = sadd.s32 4294967295, %s683_s14   ;;  %s434_s16 = sadd.s32 4294967294, %s683_s14   ;;  %s683_s14 = sphi %s718_s14, %s21_s14   ;;  %s679_s13 = sphi %s716_s13, %s937_s13   ;;  %s675_s12 = sphi %s714_s12, %s936_s12   ;;  %s671_s11 = sphi %s712_s11, %s935_s11   ;;  %s667_s10 = sphi %s710_s10, %s934_s10   ;;  %s663_s9 = sphi %s708_s9, %s933_s9  }
   0x9   : > { %s33_s17 = sadd.s32 1, %s679_s13  ;;  %s42_s18 = sadd.s32 1, %s671_s11 }
   0xa   : > { %p35_p0 = scmp.ge.s32.totalorder %s33_s17, 2  ;;  %p49_p1 = scmp.ne.s32.totalorder %s671_s11, %s667_s10 }
   0xb   : > { %p50_p2 = scmp.eq.s32.totalorder %s683_s14, 0  ;;  %p55_p3 = scmp.ne.s32.totalorder %s667_s10, %s663_s9 }
   0xc   : > { %s939_s17 = smov (%p35_p0, %s33_s17), 0  ;;  %p56_p5 = scmp.eq.s32.totalorder %s433_s15, 0 }
   0xd   : > { %p749_p4 = por %p50_p2, %p49_p1  ;;  %s37_s20 = ssub.s32 %s679_s13, %s939_s17 }
   0xe   : > { %p107_p6 = scmp.eq.s32.totalorder %s433_s15, 1  ;;  %p40_p7 = scmp.eq.s32.totalorder %s37_s20, 0 }
   0xf   : > { %p755_p8 = por %p56_p5, %p55_p3  ;;  %p113_p10 = scmp.eq.s32.totalorder %s434_s16, 1 }
  0x10   : > { %p759_p9 = por %p107_p6, %p49_p1  ;;  %p436_p12 = scmp.ge.s32.totalorder %s683_s14, 2 }
  0x11   : > { %s764_s23 = scalar_select %p40_p7, %s671_s11, %s42_s18  }
  0x12   : > { %p766_p11 = por %p113_p10, %p55_p3  ;;  %p478_p13 = scmp.lt.s32.totalorder %s683_s14, 2 }
  0x13   : > { %s773_s25 = sand.u32 1, %s671_s11   ;;  %s457_s27 = smul.u32 96, %s679_s13 }
  0x14   : > { %s456_s26 = smul.u32 6, %s773_s25  ;;  %p779_p0 = pnand %p478_p13, %p749_p4 }
  0x15   : > { %s144_s3 = scalar_lea.hbm %s924_s0, %s457_s27  ;;  %p440_p1 = scmp.ge.s32.totalorder %s683_s14, 1 }
  0x16   : > { %s137_s4 = scalar_lea.vmem [#allocation2], %s456_s26  ;;  %s134_s6 = scalar_lea.sflag [#allocation3], %s773_s25 }
  0x17   : > { %s145_s5 = sshll.u32 %s137_s4, 4  ;;  %p545_p2 = pneg %p779_p0  ;;  %s146_s5 = int_to_ptr.vmem [resolvable:$true] %s145_s5 }
  0x18   : > { %s556_s7 = scalar_lea.vmem %s146_s5, 96  ;;  %s685_s8 = smov [#allocation2]  }
  0x19   : > { %p557_p3 = scmp.ne.s32.totalorder %s146_s5, %s556_s7  ;;  %s561_s15 = sshll.u32 %s685_s8, 4  ;;  %s562_s15 = int_to_ptr.vmem [resolvable:$false] %s561_s15 }
  0x1a   : > { %s563_s16 = scalar_lea.vmem %s562_s15, 192  ;;  %p564_p6 = scmp.lt.s32.totalorder %s146_s5, %s562_s15 }
  0x1b   : > { %p559_p4 = pnand %p557_p3, %p545_p2  ;;  %p565_p7 = scmp.lt.s32.totalorder %s563_s16, %s556_s7 }
  0x1d   : > { %p560_p5 = pneg %p559_p4  ;;  %p566_p10 = por %p565_p7, %p564_p6 }
  0x1f   : > { %p567_p13 = pnand %p566_p10, %p560_p5 }
  0x21   : > { %570 = shalt.err (!%p567_p13)
}
  0x22   : > { %s686_s18 = smov 32   ;;  %s687_s19 = smov 2  }
  0x23   : > { %470 = dma.hbm_to_vmem [thread:$0]  (!%p779_p0), %s144_s3, 96, %s146_s5, %s134_s6, %s686_s18, %s686_s18, %s687_s19  }
  0x24   : > { %p172_p3 = scmp.lt.s32.totalorder %s683_s14, 3  ;;  %s438_s20 = sshll.u32 %s773_s25, 1 }
  0x25   : > { %s439_s26 = sshll.u32 %s679_s13, 5  ;;  %s159_s7 = scalar_lea.vmem [#allocation5], %s438_s20 }
  0x26   : > { %p800_p4 = pnand %p440_p1, %p172_p3  ;;  %s165_s4 = scalar_lea.hbm %s925_s1, %s439_s26 }
  0x27   : > { %s167_s8 = sshll.u32 %s159_s7, 4  ;;  %s156_s15 = scalar_lea.sflag [#allocation6], %s773_s25  ;;  %s168_s8 = int_to_ptr.vmem [resolvable:$true] %s167_s8 }
  0x28   : > { %s584_s16 = scalar_lea.vmem %s168_s8, 32  ;;  %s688_s3 = smov [#allocation5]  }
  0x29   : > { %p585_p5 = scmp.ne.s32.totalorder %s168_s8, %s584_s16  ;;  %s589_s5 = sshll.u32 %s688_s3, 4  ;;  %s590_s5 = int_to_ptr.vmem [resolvable:$false] %s589_s5 }
  0x2a   : > { %s591_s6 = scalar_lea.vmem %s590_s5, 64  ;;  %p592_p1 = scmp.lt.s32.totalorder %s168_s8, %s590_s5 }
  0x2b   : > { %p587_p6 = pnand %p585_p5, %p545_p2  ;;  %p593_p10 = scmp.lt.s32.totalorder %s591_s6, %s584_s16 }
  0x2d   : > { %p588_p7 = pneg %p587_p6  ;;  %p594_p13 = por %p593_p10, %p592_p1 }
  0x2f   : > { %p595_p3 = pnand %p594_p13, %p588_p7 }
  0x31   : > { %598 = shalt.err (!%p595_p3)
}
  0x32   : > { %473 = dma.hbm_to_vmem [thread:$0]  (!%p779_p0), %s165_s4, 32, %s168_s8, %s156_s15  }
  0x33   : > { %176 = sbr.rel (%p800_p4) target bundleno = 138 (0x8a), region = 28  ;;  %s816_s25 = sand.u32 (!%p800_p4), 1, %s667_s10  }
  0x34   : > { %s458_s18 = smul.u32 (!%p800_p4), 6, %s816_s25  ;;  %s179_s19 = scalar_lea.sflag (!%p800_p4), [#allocation3], %s816_s25 }
  0x36   : > { %s182_s20 = scalar_lea.vmem (!%p800_p4), [#allocation2], %s458_s18 }
  0x38   : > { %650 = dma.done.wait (%p755_p8), %s179_s19, 96  }
  0x39   : > { %652 = vsyncadd (%p755_p8), %s179_s19, 4294967200  ;;  %s441_s28 = sshll.u32 %s816_s25, 1  ;;  %s188_s26 = scalar_lea.sflag [#allocation6], %s816_s25 }
  0x3a   : > { %s826_s27 = scalar_lea.vmem [#allocation5], %s441_s28 }
  0x3b   : > { %654 = dma.done.wait (%p755_p8), %s188_s26, 32  }
  0x3c   : > { %656 = vsyncadd (%p755_p8), %s188_s26, 4294967264  ;;  %s459_s29 = smul.u32 14, %s816_s25  ;;  %v689_v0 = vmov 0.0   ;;  %vm232_vm0 = vcmask 1041408   ;;  %v228_v1 = vld [vmem:[%s182_s20] sm:$0x3] }
  0x3d   : > { %v229_v2 = vld [vmem:[%s182_s20 + $0x2] sm:$0x3]  ;;  %v230_v3 = vld [vmem:[%s182_s20 + $0x4] sm:$0x3]  ;;  %v233_v4 = vsel %vm232_vm0, %v228_v1, -inf  ;;  %s460_s21 = smul.u32 224, %s675_s12 }
  0x3e   : > { %s833_s30 = scalar_lea.vmem [#allocation7], %s459_s29  ;;  %v234_v5 = vsel %vm232_vm0, %v229_v2, -inf  ;;  %v235_v6 = vsel %vm232_vm0, %v230_v3, -inf  ;;  %v231_v23 = vld [vmem:[%s826_s27] sm:$0x3]  ;;  %s313_s16 = scalar_lea.sflag [#allocation4], %s816_s25 }
  0x3f   : > { %221 = vst [vmem:[%s833_s30] sm:$0x3] %v689_v0  ;;  %222 = vst [vmem:[%s833_s30 + $0x2] sm:$0x3] %v689_v0  ;;  %v236_v7 = vmax.f32 %v233_v4, %v234_v5  ;;  %vm259_vm1 = vcmp.eq.s32.totalorder %v231_v23, 0  ;;  %vm260_vm2 = vcmp.eq.s32.totalorder %v231_v23, 1  ;;  %vm261_vm3 = vcmp.eq.s32.totalorder %v231_v23, 2  ;;  %s873_s15 = scalar_lea.hbm %s926_s2, %s460_s21 }
  0x40   : > { %223 = vst [vmem:[%s833_s30 + $0x4] sm:$0x3] %v689_v0  ;;  %224 = vst [vmem:[%s833_s30 + $0x6] sm:$0x3] %v689_v0  ;;  %v442_v24 = vsel %vm259_vm1, 1.0, %v689_v0  ;;  %v443_v26 = vsel %vm260_vm2, 1.0, %v689_v0 }
  0x41   : > { %225 = vst [vmem:[%s833_s30 + $0x8] sm:$0x3] %v689_v0  ;;  %226 = vst [vmem:[%s833_s30 + $0xa] sm:$0x3] %v689_v0  ;;  %v237_v8 = vmax.f32 %v236_v7, %v235_v6  ;;  %v444_v28 = vsel %vm261_vm3, 1.0, %v689_v0  ;;  %s326_s4 = sshll.u32 %s833_s30, 4  ;;  %s875_s4 = int_to_ptr.vmem [resolvable:$true] %s326_s4 }
  0x42   : > { %227 = vst [vmem:[%s833_s30 + $0xc] sm:$0x3] %v689_v0  ;;  %s599_s3 = scalar_lea.vmem %s875_s4, 224  ;;  %s690_s12 = smov [#allocation7]  }
  0x43   : > { %v238_v9 = vsub.f32 %v228_v1, %v237_v8  ;;  %v239_v10 = vsub.f32 %v229_v2, %v237_v8  ;;  %v240_v11 = vsub.f32 %v230_v3, %v237_v8  ;;  %p600_p8 = scmp.ne.s32.totalorder %s875_s4, %s599_s3  ;;  %s603_s5 = sshll.u32 %s690_s12, 4  ;;  %s604_s5 = int_to_ptr.vmem [resolvable:$false] %s603_s5 }
  0x44   : > { %s605_s6 = scalar_lea.vmem %s604_s5, 448  ;;  %p606_p4 = scmp.lt.s32.totalorder %s875_s4, %s604_s5 }
  0x45   : > { %v241_v12 = vmul.f32 1.442695, %v238_v9  ;;  %v243_v13 = vmul.f32 1.442695, %v239_v10  ;;  %v245_v14 = vmul.f32 1.442695, %v240_v11  ;;  %v276_v25 = vmul.f32 %v442_v24, %v238_v9  ;;  %p601_p0 = pnand %p600_p8, %p759_p9  ;;  %p607_p5 = scmp.lt.s32.totalorder %s605_s6, %s599_s3 }
  0x46   : > { %v277_v27 = vmul.f32 %v443_v26, %v239_v10  ;;  %v278_v31 = vmul.f32 %v444_v28, %v240_v11  ;;  %v289_v39 = vld [vmem:[%s833_s30] sm:$0x3]  ;;  %v290_v40 = vld [vmem:[%s833_s30 + $0x2] sm:$0x3] }
  0x47   : > { %533 = vpow2.f32 %v241_v12  ;;  %v279_v30 = vsel %vm232_vm0, %v276_v25, 0.0  ;;  %v445_v32 = vld [vmem:[%s833_s30 + $0x6] sm:$0x3]  ;;  %v291_v44 = vld [vmem:[%s833_s30 + $0x4] sm:$0x3]  ;;  %p602_p2 = pneg %p601_p0  ;;  %p608_p6 = por %p607_p5, %p606_p4 }
  0x48   : > { %535 = vpow2.f32 %v243_v13  ;;  %v280_v35 = vsel %vm232_vm0, %v277_v27, 0.0  ;;  %v446_v37 = vld [vmem:[%s833_s30 + $0x8] sm:$0x3]  ;;  %v447_v38 = vld [vmem:[%s833_s30 + $0xa] sm:$0x3]  ;;  %v282_v47 = vsel %vm232_vm0, %v278_v31, 0.0 }
  0x49   : > { %537 = vpow2.f32 %v245_v14  ;;  %v281_v46 = vadd.f32 %v280_v35, %v279_v30  ;;  %v451_v1 = vld [vmem:[%s833_s30 + $0xc] sm:$0x3]  ;;  %p609_p7 = pnand %p608_p6, %p602_p2 }
  0x4b   : > { %v283_v60 = vadd.f32 %v282_v47, %v281_v46 }
  0x54   : > { %v534_v15 = vpop.eup %533 }
  0x55   : > { %v536_v16 = vpop.eup %535  ;;  %v247_v17 = vsel %vm232_vm0, %v534_v15, 0.0 }
  0x56   : > { %v538_v18 = vpop.eup %537  ;;  %v248_v19 = vsel %vm232_vm0, %v536_v16, 0.0 }
  0x57   : > { %v249_v20 = vadd.f32 %v248_v19, %v247_v17  ;;  %v250_v21 = vsel %vm232_vm0, %v538_v18, 0.0 }
  0x59   : > { %v251_v22 = vadd.f32 %v250_v21, %v249_v20 }
  0x5b   : > { %539 = vrcp.f32 %v251_v22 }
  0x5c   : > { %541 = vlog2.f32 %v251_v22 }
  0x68   : > { %v540_v29 = vpop.eup %539 }
  0x69   : > { %v254_v33 = vmul.f32 %v540_v29, %v534_v15  ;;  %v255_v34 = vmul.f32 %v540_v29, %v536_v16  ;;  %v256_v36 = vmul.f32 %v540_v29, %v538_v18  ;;  %v542_v50 = vpop.eup %541 }
  0x6a   : > { %v258_v59 = vmul.f32 0.6931472, %v542_v50 }
  0x6b   : > { %v268_v41 = vmul.f32 %v442_v24, %v254_v33  ;;  %v269_v42 = vmul.f32 %v443_v26, %v255_v34  ;;  %v270_v43 = vmul.f32 %v444_v28, %v256_v36  ;;  %v302_v45 = vadd.f32 %v445_v32, %v254_v33 }
  0x6c   : > { %v303_v48 = vadd.f32 %v446_v37, %v255_v34  ;;  %v304_v49 = vadd.f32 %v447_v38, %v256_v36  ;;  %v284_v62 = vsub.f32 %v258_v59, %v283_v60 }
  0x6d   : > { %v271_v51 = vsel %vm232_vm0, %v268_v41, 0.0  ;;  %v292_v52 = vadd.f32 %v289_v39, %v268_v41  ;;  %v272_v53 = vsel %vm232_vm0, %v269_v42, 0.0  ;;  %v293_v54 = vadd.f32 %v290_v40, %v269_v42  ;;  %448 = vst [vmem:[%s833_s30 + $0x6] sm:$0x3] %v302_v45 }
  0x6e   : > { %v273_v55 = vadd.f32 %v272_v53, %v271_v51  ;;  %v274_v56 = vsel %vm232_vm0, %v270_v43, 0.0  ;;  %v294_v57 = vadd.f32 %v291_v44, %v270_v43  ;;  %449 = vst [vmem:[%s833_s30 + $0x8] sm:$0x3] %v303_v48  ;;  %450 = vst [vmem:[%s833_s30 + $0xa] sm:$0x3] %v304_v49 }
  0x6f   : > { %295 = vst [vmem:[%s833_s30] sm:$0x3] %v292_v52  ;;  %296 = vst [vmem:[%s833_s30 + $0x2] sm:$0x3] %v293_v54 }
  0x70   : > { %v275_v58 = vadd.f32 %v274_v56, %v273_v55  ;;  %297 = vst [vmem:[%s833_s30 + $0x4] sm:$0x3] %v294_v57 }
  0x72   : > { %v285_v61 = vsub.f32 1.0, %v275_v58 }
  0x74   : > { %v286_v63 = vmax.f32 %v285_v61, 0.0 }
  0x76   : > { %v287_v0 = vmul.f32 %v286_v63, %v286_v63 }
  0x78   : > { %v288_v2 = vmul.f32 %v287_v0, %v284_v62 }
  0x7a   : > { %v310_v3 = vadd.f32 %v451_v1, %v288_v2 }
  0x7c   : > { %452 = vst [vmem:[%s833_s30 + $0xc] sm:$0x3] %v310_v3 }
  0x7d   : > { %612 = shalt.err (!%p609_p7)
}
  0x7e   : > { %s613_s18 = scalar_lea.hbm %s873_s15, 224  ;;  %s617_s28 = scalar_lea.hbm %s926_s2, 448 }
  0x7f   : > { %p614_p1 = scmp.ne.s32.totalorder %s873_s15, %s613_s18  ;;  %p618_p3 = scmp.lt.s32.totalorder %s873_s15, %s926_s2 }
  0x80   : > { %p619_p8 = scmp.lt.s32.totalorder %s617_s28, %s613_s18 }
  0x81   : > { %p615_p10 = pnand %p614_p1, %p759_p9 }
  0x82   : > { %p620_p0 = por %p619_p8, %p618_p3 }
  0x83   : > { %p616_p13 = pneg %p615_p10 }
  0x85   : > { %p621_p2 = pnand %p620_p0, %p616_p13 }
  0x87   : > { %624 = shalt.err (!%p621_p2)
}
  0x88   : > { %s691_s29 = smov 32   ;;  %s692_s30 = smov 2  }
  0x89   : > { %465 = dma.vmem_to_hbm [thread:$0]  (%p759_p9), %s875_s4, 224, %s873_s15, %s313_s16, %s691_s29, %s691_s29, %s692_s30  }
  0x8a PF: > { %s341_s21 = sand.u32 1, %s663_s9   ;;  %p475_p4 = pnand %p436_p12, %p766_p11 }
  0x8b   : > { %s342_s7 = scalar_lea.sflag [#allocation4], %s341_s21 }
  0x8c   : > { %p476_p5 = pneg %p475_p4 }
  0x8e   : > { %658 = dma.done.wait (%p476_p5), %s342_s7, 224  }
  0x8f   : > { %660 = vsyncadd (%p476_p5), %s342_s7, 4294967072  ;;  %s21_s14 = sadd.s32 1, %s683_s14   ;;  %s933_s9 = smov %s667_s10 }
  0x90   : > { %p18_p6 = scmp.ge.s32.totalorder %s21_s14, 4   ;;  %s934_s10 = smov %s671_s11 }
  0x91   : > { %s935_s11 = smov %s764_s23  ;;  %s936_s12 = smov %s679_s13 }
  0x92   : > { %s937_s13 = smov %s939_s17  ;;  %20 = sbr.rel (!%p18_p6) target bundleno = 8 (0x8), region = 92 }
  0x97   :  { %347 = vsyncpa [#allocation3], 1 }
  0x98   :  { %349 = vsyncpa [#allocation3 + $0x1], 1 }
  0x99   :  { %350 = vsyncpa [#allocation6], 1 }
  0x9a   :  { %352 = vsyncpa [#allocation6 + $0x1], 1 }
  0x9b   :  { %353 = vsyncpa [#allocation4], 1 }
  0x9c   :  { %355 = vsyncpa [#allocation4 + $0x1], 1 }

</bundles_post_ra>
